<compile_context>
chip_gen: v7x
topology: tpu7x:2x2x1
jax: 0.10.0
libtpu: 0.0.40
codegen_flags: <defaults>
</compile_context>

<pallas_src>
import functools

import jax
import jax.numpy as jnp
from jax import lax
from jax.experimental import pallas as pl
from jax.experimental.pallas import tpu as pltpu

N_EMBD = 128        # module constant (n_embd)
BLOCK_SIZE = 256    # module constant (block_size; max sequence length)


def _head_kernel(x_ref, wqkv_ref, o_ref, *, scale):
    """One batch block of single-head causal self-attention (eval mode).

    x_ref    : (bb, T, C)   activation block
    wqkv_ref : (3, C, hs)   stacked, pre-transposed Q/K/V projection weights
    o_ref    : (bb, T, hs)  attention output block
    """
    # bf16 MXU operands, f32 accumulation: bf16 is the native MXU rate on
    # v5e/v6e/v7x and halves the footprint of the probability tensor.
    x_b = x_ref[...].astype(jnp.bfloat16)                     # (bb, T, C)
    wq = wqkv_ref[0].astype(jnp.bfloat16)                     # (C, hs)
    wk = wqkv_ref[1].astype(jnp.bfloat16)
    wv = wqkv_ref[2].astype(jnp.bfloat16)

    # Q/K/V projections (nn.Linear without bias).  einsum keeps the lane dim
    # untouched — no reshape round-trip through VMEM.
    q = jnp.einsum('btc,cd->btd', x_b, wq, preferred_element_type=jnp.float32)
    k = jnp.einsum('btc,cd->btd', x_b, wk, preferred_element_type=jnp.float32)
    v = jnp.einsum('btc,cd->btd', x_b, wv, preferred_element_type=jnp.float32)

    # Fold 1/sqrt(head_size) into q: touches bb*T*hs elements, not bb*T*T.
    q = q * jnp.float32(scale)

    # scores[b, t, u] = <q[b, t], k[b, u]>
    scores = jnp.einsum('btd,bud->btu',
                        q.astype(jnp.bfloat16), k.astype(jnp.bfloat16),
                        preferred_element_type=jnp.float32)    # (bb, T, T)

    # Causal (lower-triangular) mask from 2-D iotas.  Finite large-negative
    # instead of -inf so a hypothetical fully-masked row yields a uniform
    # distribution instead of NaN.
    T = scores.shape[1]
    row = lax.broadcasted_iota(jnp.int32, (T, T), 0)
    col = lax.broadcasted_iota(jnp.int32, (T, T), 1)
    causal = (col <= row)[None, :, :]                          # (1, T, T)
    scores = jnp.where(causal, scores, jnp.float32(-1e30))

    # Numerically stable softmax.  Exact reciprocal on the tiny (bb, T, 1)
    # denominator (softmax parity with the reference); the large (bb, T, T)
    # tensor only sees a single VPU multiply.
    scores = scores - jnp.max(scores, axis=-1, keepdims=True)
    p = jnp.exp(scores)
    denom = jnp.sum(p, axis=-1, keepdims=True)
    wei = p * (jnp.float32(1.0) / denom)                       # (bb, T, T)
    # (attention dropout: identity in eval mode)

    out = jnp.einsum('btu,bud->btd',
                     wei.astype(jnp.bfloat16), v.astype(jnp.bfloat16),
                     preferred_element_type=jnp.float32)       # (bb, T, hs)

    o_ref[...] = out.astype(o_ref.dtype)


def _pick_batch_block(B, T, C, hs, target_rows=4096,
                      vmem_budget_bytes=24 * 1024 * 1024):
    """Batch rows per grid step.

    * amortize the ~0.35us per-grid-step overhead: aim for bb*T ~ target_rows
    * cap estimated live VMEM (~x + out double buffers + softmax temporaries)
      at ~24 MiB so the tiling also lands on v5e / v7x
    * keep at least 2 grid steps when B >= 2 (v7x megacore sharding)
    * bb must divide B
    """
    hs_pad = ((hs + 127) // 128) * 128
    per_elem = (T * C * 4 * 2          # x block, double buffered (f32)
                + T * hs_pad * 4 * 2   # out block (lane padded), double buffered
                + T * T * 10)          # scores/p (f32) + bf16 probabilities
    bb_vmem = max(1, vmem_budget_bytes // max(per_elem, 1))
    bb = max(1, min(B, target_rows // max(T, 1), bb_vmem))
    if B >= 2:
        bb = max(1, min(bb, B // 2))   # keep grid length >= 2 for v7x
    while B % bb:
        bb -= 1
    return bb


def head_attention(x, wq_t, wk_t, wv_t):
    """x: (B, T, C); wq_t/wk_t/wv_t: (C, head_size) (pre-transposed Linear weights)."""
    B, T, C = x.shape
    hs = wq_t.shape[1]
    assert C == N_EMBD
    assert T <= BLOCK_SIZE
    assert wq_t.shape == wk_t.shape == wv_t.shape == (C, hs)

    # Single fused weight operand: one resident ref / one DMA per grid step.
    # (In a real model this stack would be done once at parameter-load time.)
    wqkv = jnp.stack([wq_t, wk_t, wv_t], axis=0)               # (3, C, hs)

    bb = _pick_batch_block(B, T, C, hs)
    grid = (B // bb,)

    kernel = functools.partial(_head_kernel, scale=hs ** (-0.5))
    return pl.pallas_call(
        kernel,
        out_shape=jax.ShapeDtypeStruct((B, T, hs), x.dtype),
        grid_spec=pltpu.PrefetchScalarGridSpec(
            num_scalar_prefetch=0,
            grid=grid,
            in_specs=[
                pl.BlockSpec((bb, T, C), lambda b: (b, 0, 0)),   # x batch block
                pl.BlockSpec((3, C, hs), lambda b: (0, 0, 0)),   # stacked Wq/Wk/Wv
            ],
            out_specs=pl.BlockSpec((bb, T, hs), lambda b: (b, 0, 0)),
        ),
        compiler_params=pltpu.CompilerParams(
            dimension_semantics=("parallel",),
            vmem_limit_bytes=48 * 1024 * 1024,
        ),
    )(x, wqkv)


def _reference(x, wq_t, wk_t, wv_t):
    """Pure-JAX reference mirroring the PyTorch `Head.forward` (eval mode)."""
    T = x.shape[1]
    hs = wq_t.shape[1]
    q = x @ wq_t
    k = x @ wk_t
    v = x @ wv_t
    wei = jnp.einsum('btd,bud->btu', q, k) * hs ** (-0.5)
    mask = jnp.tril(jnp.ones((T, T), bool))
    wei = jnp.where(mask[None], wei, -jnp.inf)
    wei = jax.nn.softmax(wei, axis=-1)
    return jnp.einsum('btu,bud->btd', wei, v)


if __name__ == "__main__":
    B, T = 2, 8
    hs = 32                 # head_size
    C = N_EMBD

    key = jax.random.PRNGKey(0)
    kx, k1, k2, k3 = jax.random.split(key, 4)

    x = jax.random.normal(kx, (B, T, C), dtype=jnp.float32)
    # nn.Linear(n_embd, head_size, bias=False) weights, stored pre-transposed
    # as (C, hs) so that x @ W matches PyTorch's x @ weight.T.
    wk_t = jax.random.normal(k1, (C, hs), dtype=jnp.float32) * 0.02
    wq_t = jax.random.normal(k2, (C, hs), dtype=jnp.float32) * 0.02
    wv_t = jax.random.normal(k3, (C, hs), dtype=jnp.float32) * 0.02

    y = head_attention(x, wq_t, wk_t, wv_t)
    y = jax.block_until_ready(y)

    y_ref = _reference(x, wq_t, wk_t, wv_t)
    assert y.shape == (B, T, hs)
    # Tolerance accounts for bf16 MXU operands (f32 accumulation) vs the pure
    # f32 reference.
    assert jnp.allclose(y, y_ref, atol=2e-2, rtol=2e-2), "mismatch vs reference"

    print("KERNEL_OK")
</pallas_src>

<mosaic_0001>
module attributes {stable_mosaic.version = 11 : i64} {
  func.func @_head_kernel(%arg0: i32, %arg1: memref<1x8x128xf32, #tpu.memory_space<vmem>>, %arg2: memref<3x128x32xf32, #tpu.memory_space<vmem>>, %arg3: memref<1x8x32xf32, #tpu.memory_space<vmem>>) attributes {dimension_semantics = [#tpu.dimension_semantics<parallel>], iteration_bounds = array<i64: 2>, scalar_prefetch = 0 : i64, scratch_operands = 0 : i64, tpu.core_type = #tpu.core_type<tc>, window_params = [{transform_indices = @transform_0, window_bounds = array<i64: 1, 8, 128>}, {pipeline_mode = #tpu.pipeline_mode<synchronous>, transform_indices = @transform_1, window_bounds = array<i64: 3, 128, 32>}, {transform_indices = @transform_2, window_bounds = array<i64: 1, 8, 32>}]} {
    %c0 = arith.constant 0 : index
    %c0_0 = arith.constant 0 : index
    %c0_1 = arith.constant 0 : index
    %0 = vector.load %arg1[%c0, %c0_0, %c0_1] : memref<1x8x128xf32, #tpu.memory_space<vmem>>, vector<1x8x128xf32>
    %1 = arith.truncf %0 : vector<1x8x128xf32> to vector<1x8x128xbf16>
    %c0_2 = arith.constant 0 : index
    %c0_3 = arith.constant 0 : index
    %c0_4 = arith.constant 0 : index
    %2 = vector.load %arg2[%c0_2, %c0_3, %c0_4] : memref<3x128x32xf32, #tpu.memory_space<vmem>>, vector<1x128x32xf32>
    %3 = vector.shape_cast %2 : vector<1x128x32xf32> to vector<128x32xf32>
    %4 = arith.truncf %3 : vector<128x32xf32> to vector<128x32xbf16>
    %c1 = arith.constant 1 : index
    %c0_5 = arith.constant 0 : index
    %c0_6 = arith.constant 0 : index
    %5 = vector.load %arg2[%c1, %c0_5, %c0_6] : memref<3x128x32xf32, #tpu.memory_space<vmem>>, vector<1x128x32xf32>
    %6 = vector.shape_cast %5 : vector<1x128x32xf32> to vector<128x32xf32>
    %7 = arith.truncf %6 : vector<128x32xf32> to vector<128x32xbf16>
    %c2 = arith.constant 2 : index
    %c0_7 = arith.constant 0 : index
    %c0_8 = arith.constant 0 : index
    %8 = vector.load %arg2[%c2, %c0_7, %c0_8] : memref<3x128x32xf32, #tpu.memory_space<vmem>>, vector<1x128x32xf32>
    %9 = vector.shape_cast %8 : vector<1x128x32xf32> to vector<128x32xf32>
    %10 = arith.truncf %9 : vector<128x32xf32> to vector<128x32xbf16>
    "tpu.trace_start"() <{level = 10 : i32, message = "btc,cd->btd"}> : () -> ()
    %cst = arith.constant dense<0.000000e+00> : vector<1x8x32xf32>
    %11 = tpu.matmul %1, %4, %cst {dimension_numbers = #tpu.dot_dimension_numbers<[2], [0], [0, 1], [1], [0, 0, 0, 1, 1, 1], [], []>} : vector<1x8x128xbf16>, vector<128x32xbf16>, vector<1x8x32xf32> -> vector<1x8x32xf32>
    %cst_9 = arith.constant dense<0.000000e+00> : vector<1x8x32xf32>
    %12 = tpu.matmul %1, %7, %cst_9 {dimension_numbers = #tpu.dot_dimension_numbers<[2], [0], [0, 1], [1], [0, 0, 0, 1, 1, 1], [], []>} : vector<1x8x128xbf16>, vector<128x32xbf16>, vector<1x8x32xf32> -> vector<1x8x32xf32>
    %cst_10 = arith.constant dense<0.000000e+00> : vector<1x8x32xf32>
    %13 = tpu.matmul %1, %10, %cst_10 {dimension_numbers = #tpu.dot_dimension_numbers<[2], [0], [0, 1], [1], [0, 0, 0, 1, 1, 1], [], []>} : vector<1x8x128xbf16>, vector<128x32xbf16>, vector<1x8x32xf32> -> vector<1x8x32xf32>
    "tpu.trace_stop"() : () -> ()
    %cst_11 = arith.constant 0.176776692 : f32
    %14 = vector.broadcast %cst_11 : f32 to vector<1x8x32xf32>
    %15 = arith.mulf %11, %14 : vector<1x8x32xf32>
    %16 = arith.truncf %15 : vector<1x8x32xf32> to vector<1x8x32xbf16>
    %17 = arith.truncf %12 : vector<1x8x32xf32> to vector<1x8x32xbf16>
    "tpu.trace_start"() <{level = 10 : i32, message = "btd,bud->btu"}> : () -> ()
    %cst_12 = arith.constant dense<0.000000e+00> : vector<1x8x8xf32>
    %18 = tpu.matmul %16, %17, %cst_12 {dimension_numbers = #tpu.dot_dimension_numbers<[2], [2], [1], [1], [0, 0, 0, 1, 1, 1], [0], [0]>} : vector<1x8x32xbf16>, vector<1x8x32xbf16>, vector<1x8x8xf32> -> vector<1x8x8xf32>
    "tpu.trace_stop"() : () -> ()
    %19 = tpu.iota {dimensions = array<i32: 0>} : vector<8x8xi32>
    %20 = tpu.iota {dimensions = array<i32: 1>} : vector<8x8xi32>
    %21 = arith.cmpi sle, %20, %19 : vector<8x8xi32>
    %22 = vector.shape_cast %21 : vector<8x8xi1> to vector<1x8x8xi1>
    %cst_13 = arith.constant -1.000000e+30 : f32
    %23 = vector.broadcast %cst_13 : f32 to vector<1x8x8xf32>
    %24 = arith.select %22, %18, %23 : vector<1x8x8xi1>, vector<1x8x8xf32>
    %cst_14 = arith.constant dense<0xFF800000> : vector<1x8xf32>
    %25 = vector.multi_reduction <maximumf>, %24, %cst_14 [2] : vector<1x8x8xf32> to vector<1x8xf32>
    %26 = vector.shape_cast %25 : vector<1x8xf32> to vector<1x8x1xf32>
    %27 = vector.broadcast %26 : vector<1x8x1xf32> to vector<1x8x8xf32>
    %28 = arith.subf %24, %27 : vector<1x8x8xf32>
    %29 = math.exp %28 : vector<1x8x8xf32>
    %cst_15 = arith.constant dense<0.000000e+00> : vector<1x8xf32>
    %30 = vector.multi_reduction <add>, %29, %cst_15 [2] : vector<1x8x8xf32> to vector<1x8xf32>
    %31 = vector.shape_cast %30 : vector<1x8xf32> to vector<1x8x1xf32>
    %cst_16 = arith.constant 1.000000e+00 : f32
    %32 = vector.broadcast %cst_16 : f32 to vector<1x8x1xf32>
    %33 = arith.divf %32, %31 : vector<1x8x1xf32>
    %34 = vector.broadcast %33 : vector<1x8x1xf32> to vector<1x8x8xf32>
    %35 = arith.mulf %29, %34 : vector<1x8x8xf32>
    %36 = arith.truncf %35 : vector<1x8x8xf32> to vector<1x8x8xbf16>
    %37 = arith.truncf %13 : vector<1x8x32xf32> to vector<1x8x32xbf16>
    "tpu.trace_start"() <{level = 10 : i32, message = "btu,bud->btd"}> : () -> ()
    %cst_17 = arith.constant dense<0.000000e+00> : vector<1x8x32xf32>
    %38 = tpu.matmul %36, %37, %cst_17 {dimension_numbers = #tpu.dot_dimension_numbers<[2], [1], [1], [2], [0, 0, 0, 1, 1, 2], [0], [0]>} : vector<1x8x8xbf16>, vector<1x8x32xbf16>, vector<1x8x32xf32> -> vector<1x8x32xf32>
    "tpu.trace_stop"() : () -> ()
    %c0_18 = arith.constant 0 : index
    %c0_19 = arith.constant 0 : index
    %c0_20 = arith.constant 0 : index
    %39 = vector.load %arg3[%c0_18, %c0_19, %c0_20] : memref<1x8x32xf32, #tpu.memory_space<vmem>>, vector<1x8x32xf32>
    tpu.vector_store %arg3[%c0_18, %c0_19, %c0_20], %38 {strides = array<i32>} : memref<1x8x32xf32, #tpu.memory_space<vmem>>, vector<1x8x32xf32>,
    return
  }
  func.func @transform_0(%arg0: i32) -> (i32, i32, i32) {
    %c0_i32 = arith.constant 0 : i32
    %c0_i32_0 = arith.constant 0 : i32
    %c0_i32_1 = arith.constant 0 : i32
    return %arg0, %c0_i32, %c0_i32_0 : i32, i32, i32
  }
  func.func @transform_1(%arg0: i32) -> (i32, i32, i32) {
    %c0_i32 = arith.constant 0 : i32
    %c0_i32_0 = arith.constant 0 : i32
    %c0_i32_1 = arith.constant 0 : i32
    %c0_i32_2 = arith.constant 0 : i32
    return %c0_i32, %c0_i32_0, %c0_i32_1 : i32, i32, i32
  }
  func.func @transform_2(%arg0: i32) -> (i32, i32, i32) {
    %c0_i32 = arith.constant 0 : i32
    %c0_i32_0 = arith.constant 0 : i32
    %c0_i32_1 = arith.constant 0 : i32
    return %arg0, %c0_i32, %c0_i32_0 : i32, i32, i32
  }
}

</mosaic_0001>

<bundles_post_ra>
// kernel: tpu_custom_call.1
= control target key start
LH: loop header
LB: loop body
LE: loop exit
PB: predicated region body
PF: predicated region fallthrough
CT: control target
= control target key end

     0   :  { %7 = vsyncpa [#allocation3], 0  ;;  %s1093_s0 = inlined_call_operand.vmem [shape: f32[2,8,128], index: 0, kind: input, shape index: {}]   ;;  %s1094_s1 = inlined_call_operand.vmem [shape: f32[3,128,32], index: 1, kind: input, shape index: {}]   ;;  %s1095_s2 = inlined_call_operand.hbm [shape: f32[2,8,32], index: 2, kind: output, shape index: {}]  }
   0x1   :  { %9 = vsyncpa [#allocation3 + $0x1], 0  ;;  %s802_s9 = smov 0   ;;  %s804_s10 = smov 0  }
   0x2   :  { %s806_s11 = smov 0   ;;  %s808_s12 = smov 0  }
   0x3 LB: > { %s823_s13 = sadd.s32 4294967295, %s782_s12   ;;  %s528_s14 = sadd.s32 4294967294, %s782_s12   ;;  %s782_s12 = sphi %s808_s12, %s1101_s12   ;;  %s778_s11 = sphi %s806_s11, %s1100_s11   ;;  %s774_s10 = sphi %s804_s10, %s1099_s10   ;;  %s770_s9 = sphi %s802_s9, %s1098_s9  }
   0x4   : > { %s827_s15 = sadd.s32 1, %s782_s12   ;;  %s69_s16 = sadd.s32 1, %s778_s11 }
   0x5   : > { %s66_s17 = ssub.s32 %s782_s12, %s827_s15  ;;  %p79_p0 = scmp.ne.s32.totalorder %s778_s11, %s774_s10 }
   0x6   : > { %p67_p1 = scmp.eq.s32.totalorder %s66_s17, 0  ;;  %p80_p2 = scmp.eq.s32.totalorder %s823_s13, 1 }
   0x7   : > { %p85_p3 = scmp.ne.s32.totalorder %s774_s10, %s770_s9  ;;  %p86_p4 = scmp.eq.s32.totalorder %s528_s14, 1 }
   0x8   : > { %s838_s18 = scalar_select %p67_p1, %s778_s11, %s69_s16  }
   0x9   : > { %p840_p5 = por %p80_p2, %p79_p0  ;;  %p844_p6 = por %p86_p4, %p85_p3 }
   0xa   : > { %p531_p7 = scmp.ge.s32.totalorder %s782_s12, 1  ;;  %p114_p8 = scmp.lt.s32.totalorder %s782_s12, 3 }
   0xc   : > { %p115_p9 = pnand %p531_p7, %p114_p8 }
   0xd   : > { %v534_v0 = vld [vmem:[%s1094_s1 + $0x80] sm:$0xff] (!%p115_p9)  ;;  %v535_v1 = vld [vmem:[%s1094_s1 + $0x88] sm:$0xff] (!%p115_p9)  ;;  %v784_v3 = vmov (!%p115_p9), 0.0   ;;  %v536_v6 = vld [vmem:[%s1094_s1 + $0x90] sm:$0xff] (!%p115_p9)  ;;  %vm785_vm0 = vmmov (!%p115_p9), 0   ;;  %p135_p10 = scmp.lt.s32.totalorder (!%p115_p9), %s823_s13, 1 }
   0xe   : > { %118 = sbr.rel (%p115_p9) target bundleno = 1025 (0x401), region = 28  ;;  %v142_v2 = vld [vmem:[%s1094_s1] sm:$0xff] (!%p115_p9)  ;;  %623 = vmatprep.subr.bf16.mxu1 (!%p115_p9), %v784_v3  ;;  %v183_v4 = vpack.c.bf16 (!%p115_p9), %v535_v1, %v534_v0  ;;  %603 = vmatprep.subr.bf16.mxu0 (!%p115_p9), %v784_v3  ;;  %v143_v5 = vld [vmem:[%s1094_s1 + $0x8] sm:$0xff] (!%p115_p9)  ;;  %v537_v7 = vld [vmem:[%s1094_s1 + $0x98] sm:$0xff] (!%p115_p9)  ;;  %vm339_vm1 = vcmask (!%p115_p9), 261120   ;;  %vm392_vm3 = vcmask (!%p115_p9), 64512  }
   0xf   : > { %v158_v8 = vpack.c.bf16 (!%p115_p9), %v143_v5, %v142_v2  ;;  %v144_v9 = vld [vmem:[%s1094_s1 + $0x10] sm:$0xff] (!%p115_p9)  ;;  %v145_v10 = vld [vmem:[%s1094_s1 + $0x18] sm:$0xff] (!%p115_p9)  ;;  %639 = vmatprep.mubr.msk.bf16.mxu1 (!%p115_p9), %vm785_vm0, %v784_v3  ;;  %619 = vmatprep.mubr.msk.bf16.mxu0 (!%p115_p9), %vm785_vm0, %v784_v3  ;;  %v184_v11 = vpack.c.bf16 (!%p115_p9), %v537_v7, %v536_v6  ;;  %v538_v13 = vld [vmem:[%s1094_s1 + $0xa0] sm:$0xff] (!%p115_p9)  ;;  %vm410_vm4 = vcmask (!%p115_p9), 1043456   ;;  %s132_s27 = sand.u32 (!%p115_p9), 1, %s774_s10   ;;  %s569_s29 = sshll.u32 (!%p115_p9), %s823_s13, 7 }
  0x10   : > { %624 = vmatpush3.bf16.msra.mxu1 (!%p115_p9), %v183_v4  ;;  %v159_v12 = vpack.c.bf16 (!%p115_p9), %v145_v10, %v144_v9  ;;  %v539_v14 = vld [vmem:[%s1094_s1 + $0xa8] sm:$0xff] (!%p115_p9)  ;;  %v146_v15 = vld [vmem:[%s1094_s1 + $0x20] sm:$0xff] (!%p115_p9)  ;;  %v540_v19 = vld [vmem:[%s1094_s1 + $0xb0] sm:$0xff] (!%p115_p9)  ;;  %s1050_s6 = scalar_lea.hbm (!%p115_p9), %s1095_s2, %s569_s29  ;;  %s456_s7 = scalar_lea.sflag (!%p115_p9), [#allocation3], %s132_s27 }
  0x11   : > { %625 = vmatprep.subr.bf16.mxu1 (!%p115_p9), %v784_v3  ;;  %604 = vmatpush3.bf16.msra.mxu0 (!%p115_p9), %v158_v8  ;;  %v147_v16 = vld [vmem:[%s1094_s1 + $0x28] sm:$0xff] (!%p115_p9)  ;;  %v185_v17 = vpack.c.bf16 (!%p115_p9), %v539_v14, %v538_v13  ;;  %v541_v20 = vld [vmem:[%s1094_s1 + $0xb8] sm:$0xff] (!%p115_p9)  ;;  %v148_v21 = vld [vmem:[%s1094_s1 + $0x30] sm:$0xff] (!%p115_p9) }
  0x12   : > { %605 = vmatprep.subr.bf16.mxu0 (!%p115_p9), %v784_v3  ;;  %v160_v18 = vpack.c.bf16 (!%p115_p9), %v147_v16, %v146_v15  ;;  %v149_v22 = vld [vmem:[%s1094_s1 + $0x38] sm:$0xff] (!%p115_p9)  ;;  %v186_v23 = vpack.c.bf16 (!%p115_p9), %v541_v20, %v540_v19  ;;  %v542_v25 = vld [vmem:[%s1094_s1 + $0xc0] sm:$0xff] (!%p115_p9)  ;;  %v543_v26 = vld [vmem:[%s1094_s1 + $0xc8] sm:$0xff] (!%p115_p9) }
  0x13   : > { %v161_v24 = vpack.c.bf16 (!%p115_p9), %v149_v22, %v148_v21  ;;  %v150_v27 = vld [vmem:[%s1094_s1 + $0x40] sm:$0xff] (!%p115_p9)  ;;  %v151_v28 = vld [vmem:[%s1094_s1 + $0x48] sm:$0xff] (!%p115_p9)  ;;  %v187_v29 = vpack.c.bf16 (!%p115_p9), %v543_v26, %v542_v25  ;;  %v544_v31 = vld [vmem:[%s1094_s1 + $0xd0] sm:$0xff] (!%p115_p9) }
  0x14   : > { %626 = vmatpush3.bf16.msra.mxu1 (!%p115_p9), %v184_v11  ;;  %v162_v30 = vpack.c.bf16 (!%p115_p9), %v151_v28, %v150_v27  ;;  %v545_v32 = vld [vmem:[%s1094_s1 + $0xd8] sm:$0xff] (!%p115_p9)  ;;  %v152_v33 = vld [vmem:[%s1094_s1 + $0x50] sm:$0xff] (!%p115_p9)  ;;  %v546_v37 = vld [vmem:[%s1094_s1 + $0xe0] sm:$0xff] (!%p115_p9) }
  0x15   : > { %627 = vmatprep.subr.bf16.mxu1 %v784_v3  ;;  %606 = vmatpush3.bf16.msra.mxu0 %v159_v12  ;;  %v153_v34 = vld [vmem:[%s1094_s1 + $0x58] sm:$0xff]  ;;  %s136_s3 = scalar_select %p135_p10, %s823_s13, 1  ;;  %v188_v35 = vpack.c.bf16 %v545_v32, %v544_v31  ;;  %v547_v38 = vld [vmem:[%s1094_s1 + $0xe8] sm:$0xff]  ;;  %v154_v39 = vld [vmem:[%s1094_s1 + $0x60] sm:$0xff] }
  0x16   : > { %607 = vmatprep.subr.bf16.mxu0 %v784_v3  ;;  %v163_v36 = vpack.c.bf16 %v153_v34, %v152_v33  ;;  %v155_v40 = vld [vmem:[%s1094_s1 + $0x68] sm:$0xff]  ;;  %v189_v41 = vpack.c.bf16 %v547_v38, %v546_v37  ;;  %v548_v43 = vld [vmem:[%s1094_s1 + $0xf0] sm:$0xff]  ;;  %v549_v44 = vld [vmem:[%s1094_s1 + $0xf8] sm:$0xff]  ;;  %s786_s13 = smov [#allocation2]  }
  0x17   : > { %s533_s21 = sshll.u32 %s136_s3, 3  ;;  %v164_v42 = vpack.c.bf16 %v155_v40, %v154_v39  ;;  %v156_v45 = vld [vmem:[%s1094_s1 + $0x70] sm:$0xff]  ;;  %v157_v46 = vld [vmem:[%s1094_s1 + $0x78] sm:$0xff]  ;;  %v190_v47 = vpack.c.bf16 %v549_v44, %v548_v43  ;;  %v550_v63 = vld [vmem:[%s1094_s1 + $0x100] sm:$0xff]  ;;  %s724_s14 = sshll.u32 %s786_s13, 4  ;;  %s725_s14 = int_to_ptr.vmem [resolvable:$false] %s724_s14 }
  0x18   : > { %628 = vmatpush3.bf16.msra.mxu1 %v185_v17  ;;  %s138_s28 = scalar_lea.vmem %s1093_s0, %s533_s21  ;;  %v165_v49 = vpack.c.bf16 %v157_v46, %v156_v45  ;;  %v551_v0 = vld [vmem:[%s1094_s1 + $0x108] sm:$0xff]  ;;  %v552_v1 = vld [vmem:[%s1094_s1 + $0x110] sm:$0xff]  ;;  %v553_v4 = vld [vmem:[%s1094_s1 + $0x118] sm:$0xff]  ;;  %s726_s16 = scalar_lea.vmem %s725_s14, 256 }
  0x19   : > { %629 = vmatprep.subr.bf16.mxu1 %v784_v3  ;;  %608 = vmatpush3.bf16.msra.mxu0 %v160_v18  ;;  %v140_v48 = vld [vmem:[%s138_s28] sm:$0xff]  ;;  %v208_v2 = vpack.c.bf16 %v551_v0, %v550_v63  ;;  %v209_v5 = vpack.c.bf16 %v553_v4, %v552_v1  ;;  %v555_v7 = vld [vmem:[%s1094_s1 + $0x128] sm:$0xff]  ;;  %v556_v9 = vld [vmem:[%s1094_s1 + $0x130] sm:$0xff]  ;;  %s532_s28 = sshll.u32 %s132_s27, 3 }
  0x1a   : > { %609 = vmatprep.subr.bf16.mxu0 %v784_v3  ;;  %v971_v50 = vpack.c.bf16 %v140_v48, %v140_v48  ;;  %v554_v6 = vld [vmem:[%s1094_s1 + $0x120] sm:$0xff]  ;;  %v557_v10 = vld [vmem:[%s1094_s1 + $0x138] sm:$0xff]  ;;  %v559_v13 = vld [vmem:[%s1094_s1 + $0x148] sm:$0xff]  ;;  %s134_s30 = scalar_lea.vmem [#allocation2], %s532_s28 }
  0x1b   : > { %v210_v8 = vpack.c.bf16 %v555_v7, %v554_v6  ;;  %v211_v11 = vpack.c.bf16 %v557_v10, %v556_v9  ;;  %v558_v12 = vld [vmem:[%s1094_s1 + $0x140] sm:$0xff]  ;;  %v560_v15 = vld [vmem:[%s1094_s1 + $0x150] sm:$0xff]  ;;  %v561_v16 = vld [vmem:[%s1094_s1 + $0x158] sm:$0xff]  ;;  %s469_s3 = sshll.u32 %s134_s30, 4  ;;  %s1052_s3 = int_to_ptr.vmem [resolvable:$true] %s469_s3 }
  0x1c   : > { %630 = vmatpush3.bf16.msra.mxu1 %v186_v23  ;;  %v212_v14 = vpack.c.bf16 %v559_v13, %v558_v12  ;;  %v213_v17 = vpack.c.bf16 %v561_v16, %v560_v15  ;;  %v562_v18 = vld [vmem:[%s1094_s1 + $0x160] sm:$0xff]  ;;  %v563_v19 = vld [vmem:[%s1094_s1 + $0x168] sm:$0xff]  ;;  %v564_v21 = vld [vmem:[%s1094_s1 + $0x170] sm:$0xff]  ;;  %s720_s8 = scalar_lea.vmem %s1052_s3, 128  ;;  %p727_p0 = scmp.lt.s32.totalorder %s1052_s3, %s725_s14 }
  0x1d   : > { %631 = vmatprep.subr.bf16.mxu1 %v784_v3  ;;  %610 = vmatpush3.bf16.msra.mxu0 %v161_v24  ;;  %v214_v20 = vpack.c.bf16 %v563_v19, %v562_v18  ;;  %v565_v22 = vld [vmem:[%s1094_s1 + $0x178] sm:$0xff]  ;;  %v386_v24 = vlaneseq  ;;  %p721_p11 = scmp.ne.s32.totalorder %s1052_s3, %s720_s8  ;;  %p728_p1 = scmp.lt.s32.totalorder %s726_s16, %s720_s8 }
  0x1e   : > { %611 = vmatprep.subr.bf16.mxu0 %v784_v3  ;;  %v215_v23 = vpack.c.bf16 %v565_v22, %v564_v21 }
  0x1f   : > { %v387_v25 = vshrl.u32 %v386_v24, 7  ;;  %v389_v26 = vand.u32 127, %v386_v24  ;;  %p722_p12 = pnand %p721_p11, %p840_p5  ;;  %p729_p2 = por %p728_p1, %p727_p0 }
  0x20   : > { %632 = vmatpush3.bf16.msra.mxu1 %v187_v29 }
  0x21   : > { %633 = vmatprep.subr.bf16.mxu1 %v784_v3  ;;  %612 = vmatpush3.bf16.msra.mxu0 %v162_v30  ;;  %vm390_vm2 = vcmp.le.s32.totalorder %v389_v26, %v387_v25  ;;  %p723_p13 = pneg %p722_p12 }
  0x22   : > { %613 = vmatprep.subr.bf16.mxu0 %v784_v3 }
  0x23   : > { %p730_p3 = pnand %p729_p2, %p723_p13 }
  0x24   : > { %634 = vmatpush3.bf16.msra.mxu1 %v188_v35 }
  0x25   : > { %635 = vmatprep.subr.bf16.mxu1 %v784_v3  ;;  %614 = vmatpush3.bf16.msra.mxu0 %v163_v36 }
  0x26   : > { %615 = vmatprep.subr.bf16.mxu0 %v784_v3 }
  0x28   : > { %636 = vmatpush3.bf16.msra.mxu1 %v189_v41 }
  0x29   : > { %637 = vmatprep.subr.bf16.mxu1 %v784_v3  ;;  %616 = vmatpush3.bf16.msra.mxu0 %v164_v42 }
  0x2a   : > { %617 = vmatprep.subr.bf16.mxu0 %v784_v3 }
  0x2c   : > { %638 = vmatpush3.bf16.msra.mxu1 %v190_v47 }
  0x2d   : > { %618 = vmatpush3.bf16.msra.mxu0 %v165_v49  ;;  %663 = vmatprep.subr.bf16.mxu1 %v784_v3 }
  0x2e   : > { %643 = vmatprep.subr.bf16.mxu0 %v784_v3 }
  0x2f   : > { %640 = vmatmul.mubr.bf16.vlgmr.msra.gmra.mrb[0].mxu1 %v971_v50 }
  0x30   : > { %620 = vmatmul.mubr.bf16.vlgmr.msra.gmra.mrb[0].mxu0 %v971_v50  ;;  %665 = vmatprep.mubr.msk.bf16.mxu1 %vm785_vm0, %v784_v3 }
  0x31   : > { %659 = vmatprep.mubr.msk.bf16.mxu0 %vm785_vm0, %v784_v3  ;;  %644 = vmatpush3.bf16.msra.mxu0 %v208_v2 }
  0x32   : > { %645 = vmatprep.subr.bf16.mxu0 %v784_v3 }
  0x35   : > { %646 = vmatpush3.bf16.msra.mxu0 %v209_v5 }
  0x36   : > { %647 = vmatprep.subr.bf16.mxu0 %v784_v3 }
  0x39   : > { %648 = vmatpush3.bf16.msra.mxu0 %v210_v8 }
  0x3a   : > { %649 = vmatprep.subr.bf16.mxu0 %v784_v3 }
  0x3d   : > { %650 = vmatpush3.bf16.msra.mxu0 %v211_v11 }
  0x3e   : > { %651 = vmatprep.subr.bf16.mxu0 %v784_v3 }
  0x41   : > { %652 = vmatpush3.bf16.msra.mxu0 %v212_v14 }
  0x42   : > { %653 = vmatprep.subr.bf16.mxu0 %v784_v3 }
  0x45   : > { %654 = vmatpush3.bf16.msra.mxu0 %v213_v17 }
  0x46   : > { %655 = vmatprep.subr.bf16.mxu0 %v784_v3 }
  0x49   : > { %656 = vmatpush3.bf16.msra.mxu0 %v214_v20 }
  0x4a   : > { %657 = vmatprep.subr.bf16.mxu0 %v784_v3 }
  0x4d   : > { %658 = vmatpush3.bf16.msra.mxu0 %v215_v23 }
  0x50   : > { %660 = vmatmul.mubr.bf16.vlgmr.msra.gmra.mrb[4].mxu0 %v971_v50 }
 0x102   : > { %v290_v51 = vpop.f32.mrb[0].mxu1 }
 0x103   : > { %v338_v52 = vpack.c.bf16 %v290_v51, %v290_v51  ;;  %v641_v53 = vpop.f32.mrb[1].mxu1  ;;  %v250_v54 = vpop.f32.mrb[0].mxu0 }
 0x104   : > { %v293_v55 = vpop.f32.mrb[2].mxu1  ;;  %v621_v56 = vpop.f32.mrb[1].mxu0  ;;  %v336_v59 = vmul.f32 0.17677669, %v250_v54 }
 0x105   : > { %v344_v57 = vsel %vm339_vm1, %v338_v52, 0  ;;  %v642_v58 = vpop.f32.mrb[3].mxu1  ;;  %v253_v60 = vpop.f32.mrb[2].mxu0 }
 0x106   : > { %664 = vmatpush3.bf16.xpose.msra.mxu1 %v344_v57  ;;  %v622_v61 = vpop.f32.mrb[3].mxu0  ;;  %v337_v62 = vpack.c.bf16 %v336_v59, %v336_v59 }
 0x107   : > { %669 = vmatprep.subr.bf16.mxu1 %v784_v3 }
 0x10d   : > { %666 = vmatmul.mubr.msk.bf16.vlgmr.msra.gmra.mrb[4].mxu1 %vm339_vm1, %v337_v62 }
 0x10e   : > { %671 = vmatprep.mubr.msk.bf16.mxu1 %vm785_vm0, %v784_v3 }
 0x123   : > { %v330_v37 = vpop.f32.mrb[4].mxu0 }
 0x124   : > { %v661_v38 = vpop.f32.mrb[5].mxu0  ;;  %v406_v41 = vpack.c.bf16 %v330_v37, %v330_v37 }
 0x125   : > { %v333_v39 = vpop.f32.mrb[6].mxu0 }
 0x126   : > { %v662_v40 = vpop.f32.mrb[7].mxu0  ;;  %v412_v42 = vsel %vm410_vm4, %v406_v41, 0 }
 0x127   : > { %670 = vmatpush3.bf16.msra.mxu1 %v412_v42 }
 0x1e0   : > { %v380_v27 = vpop.f32.mrb[4].mxu1 }
 0x1e1   : > { %v391_v28 = vsel %vm390_vm2, %v380_v27, -1e+30  ;;  %v667_v29 = vpop.f32.mrb[5].mxu1 }
 0x1e2   : > { %v383_v30 = vpop.f32.mrb[6].mxu1  ;;  %v393_v31 = vsel %vm392_vm3, %v391_v28, -inf }
 0x1e3   : > { %394 = vmax.xlane.f32.xlu0 %v393_v31  ;;  %v668_v32 = vpop.f32.mrb[7].mxu1 }
 0x270   : > { %v395_v33 = vpop.xlane.xlu0 %394 }
 0x271   : > { %v396_v34 = vsub.f32 %v391_v28, %v395_v33 }
 0x273   : > { %v397_v35 = vmul.f32 1.442695, %v396_v34 }
 0x275   : > { %716 = vpow2.f32 %v397_v35 }
 0x27f   : > { %v717_v3 = vpop.eup %716 }
 0x280   : > { %v399_v36 = vsel %vm392_vm3, %v717_v3, 0.0 }
 0x281   : > { %400 = vadd.xlane.f32.xlu0 %v399_v36 }
 0x30e   : > { %v401_v43 = vpop.xlane.xlu0 %400 }
 0x30f   : > { %718 = vrcp.f32 %v401_v43 }
 0x319   : > { %v719_v44 = vpop.eup %718 }
 0x31a   : > { %v404_v45 = vmul.f32 %v719_v44, %v717_v3 }
 0x31c   : > { %v405_v46 = vpack.c.bf16 %v404_v45, %v404_v45 }
 0x31e   : > { %672 = vmatmul.mubr.msk.bf16.vlgmr.msra.gmra.mrb[8].mxu1 %vm392_vm3, %v405_v46 }
 0x3f1   : > { %v448_v47 = vpop.f32.mrb[8].mxu1 }
 0x3f2   : > { %454 = vst.msk [vmem:[%s134_s30] sm:$0xff] %vm339_vm1, %v448_v47  ;;  %v673_v48 = vpop.f32.mrb[9].mxu1 }
 0x3f3   : > { %v451_v49 = vpop.f32.mrb[10].mxu1 }
 0x3f4   : > { %733 = shalt.err (!%p730_p3)
}
 0x3f5   : > { %s734_s17 = scalar_lea.hbm %s1050_s6, 128  ;;  %s738_s23 = scalar_lea.hbm %s1095_s2, 256 }
 0x3f6   : > { %p735_p4 = scmp.ne.s32.totalorder %s1050_s6, %s734_s17  ;;  %p739_p9 = scmp.lt.u32.totalorder %s1050_s6, %s1095_s2 }
 0x3f7   : > { %p740_p10 = scmp.lt.u32.totalorder %s738_s23, %s734_s17  ;;  %p742_p12 = scmp.lt.u32.totalorder %s734_s17, %s1050_s6 }
 0x3f8   : > { %p736_p7 = pnand %p735_p4, %p840_p5 }
 0x3f9   : > { %p741_p11 = por %p740_p10, %p739_p9 }
 0x3fa   : > { %p737_p8 = pneg %p736_p7 }
 0x3fb   : > { %p743_p13 = por %p742_p12, %p741_p11 }
 0x3fd   : > { %p744_p0 = pnand %p743_p13, %p737_p8 }
 0x3ff   : > { %747 = shalt.err (!%p744_p0)
}
 0x400   : > { %675 = dma.vmem_to_hbm [thread:$0]  (%p840_p5), %s1052_s3, 128, %s1050_s6, %s456_s7   ;;  %v674_v50 = vpop.f32.mrb[11].mxu1 }
 0x401 PF: > { %p681_p1 = scmp.ge.s32.totalorder %s782_s12, 2  ;;  %s481_s26 = sand.u32 1, %s770_s9  }
 0x402   : > { %s482_s27 = scalar_lea.sflag [#allocation3], %s481_s26 }
 0x403   : > { %p678_p2 = pnand %p681_p1, %p844_p6 }
 0x405   : > { %765 = dma.done.wait (!%p678_p2), %s482_s27, 128  }
 0x406   : > { %767 = vsyncadd (!%p678_p2), %s482_s27, 4294967168  ;;  %p12_p3 = scmp.ge.s32.totalorder %s827_s15, 4   ;;  %s1098_s9 = smov %s774_s10 }
 0x407   : > { %s1099_s10 = smov %s778_s11  ;;  %s1100_s11 = smov %s838_s18 }
 0x408   : > { %s1101_s12 = smov %s827_s15  ;;  %14 = sbr.rel (!%p12_p3) target bundleno = 3 (0x3), region = 65 }
 0x40f   :  { %487 = vsyncpa [#allocation3], 1 }
 0x410   :  { %489 = vsyncpa [#allocation3 + $0x1], 1 }

</bundles_post_ra>
